<compile_context>
chip_gen: v7x
topology: tpu7x:2x2x1
jax: 0.10.0
libtpu: 0.0.40
codegen_flags: <defaults>
</compile_context>

<pallas_src>
import functools
import math

import jax
import jax.numpy as jnp
from jax import lax
from jax.experimental import pallas as pl
from jax.experimental.pallas import tpu as pltpu

NEG_INF = -1e30
LEAKY_SLOPE = 0.01           # F.leaky_relu default
TILE = 128                   # row tile (dst and src) for the attention kernel


def _round_up(n, m):
    return ((n + m - 1) // m) * m


def _pad2d(x, rows, cols):
    return jnp.pad(x, ((0, rows - x.shape[0]), (0, cols - x.shape[1])))


# ----------------------------------------------------------------------------
# Per-generation budgets / dtypes
# ----------------------------------------------------------------------------
def _vmem_budget_bytes():
    """~75% of per-core VMEM (v7x: 64 MiB/TC; v5e/v6e: 128 MiB), capped."""
    cap = 64 * 1024 * 1024
    try:
        cap = int(pltpu.get_tpu_info().vmem_capacity_bytes)
    except Exception:
        pass
    return min(int(cap * 0.75), 100 * 1024 * 1024)


def _exp_dtype():
    """bf16 exp on v6e/v7x (bf16 EUP ~2x throughput); f32 on v5e and older."""
    try:
        kind = jax.devices()[0].device_kind.lower()
    except Exception:
        kind = ""
    if any(t in kind for t in ("v2", "v3", "v4", "v5")):
        return jnp.float32
    return jnp.bfloat16


VMEM_BUDGET = _vmem_budget_bytes()
EXP_DTYPE = _exp_dtype()


# ----------------------------------------------------------------------------
# Tiled linear kernels: y = x @ W + b
# ----------------------------------------------------------------------------
def _linear_fullk_kernel(x_ref, w_ref, b_ref, o_ref):
    o_ref[...] = (jnp.dot(x_ref[...], w_ref[...],
                          preferred_element_type=jnp.float32)
                  + b_ref[...]).astype(o_ref.dtype)


def _linear_tiledk_kernel(x_ref, w_ref, b_ref, o_ref, acc_ref):
    @pl.when(pl.program_id(2) == 0)
    def _init():
        acc_ref[...] = jnp.zeros_like(acc_ref)

    acc_ref[...] += jnp.dot(x_ref[...], w_ref[...],
                            preferred_element_type=jnp.float32)

    @pl.when(pl.program_id(2) == pl.num_programs(2) - 1)
    def _finalize():
        o_ref[...] = (acc_ref[...] + b_ref[...]).astype(o_ref.dtype)


def linear_padded(x, w, b):
    """x: [Mp, Kp] bf16, w: [Kp, Np] bf16, b: [1, Np] f32 (all pre-padded x128)."""
    mp, kp = x.shape
    np_ = w.shape[1]
    tm = next(t for t in (512, 256, 128) if mp % t == 0)

    # Preferred path: K and N collapsed -> W fully resident, x read exactly
    # once, no f32 accumulator; full-width N feeds the 256x256 MXU.
    est = 2 * (tm * kp + tm * np_) * 2 + 2 * (kp * np_ * 2 + np_ * 4)
    if est <= VMEM_BUDGET:
        return pl.pallas_call(
            _linear_fullk_kernel,
            out_shape=jax.ShapeDtypeStruct((mp, np_), jnp.bfloat16),
            grid=(mp // tm,),
            in_specs=[
                pl.BlockSpec((tm, kp), lambda i: (i, 0)),
                pl.BlockSpec((kp, np_), lambda i: (0, 0)),
                pl.BlockSpec((1, np_), lambda i: (0, 0)),
            ],
            out_specs=pl.BlockSpec((tm, np_), lambda i: (i, 0)),
            compiler_params=pltpu.CompilerParams(
                dimension_semantics=("parallel",),
                vmem_limit_bytes=VMEM_BUDGET),
        )(x, w, b)

    # Fallback for very large K/N: classic K-tiled accumulation.
    tn = next(t for t in (256, 128) if np_ % t == 0)
    tk = next(t for t in (512, 256, 128) if kp % t == 0)
    return pl.pallas_call(
        _linear_tiledk_kernel,
        out_shape=jax.ShapeDtypeStruct((mp, np_), jnp.bfloat16),
        grid=(mp // tm, np_ // tn, kp // tk),
        in_specs=[
            pl.BlockSpec((tm, tk), lambda i, j, k: (i, k)),
            pl.BlockSpec((tk, tn), lambda i, j, k: (k, j)),
            pl.BlockSpec((1, tn), lambda i, j, k: (0, j)),
        ],
        out_specs=pl.BlockSpec((tm, tn), lambda i, j, k: (i, j)),
        scratch_shapes=[pltpu.VMEM((tm, tn), jnp.float32)],
        compiler_params=pltpu.CompilerParams(
            dimension_semantics=("parallel", "parallel", "arbitrary"),
            vmem_limit_bytes=VMEM_BUDGET),
    )(x, w, b)


# ----------------------------------------------------------------------------
# Fused hypergraph attention message-passing kernel (flash-style)
# ----------------------------------------------------------------------------
def _hyper_attn_kernel(*refs, dq, dv, kv_resident, has_drop, exp_dtype):
    if has_drop:
        flag_ref, q_ref, kv_ref, m_ref, d_ref, o_ref, m_sc, l_sc, acc_sc = refs
    else:
        flag_ref, q_ref, kv_ref, m_ref, o_ref, m_sc, l_sc, acc_sc = refs
        d_ref = None

    i = pl.program_id(0)
    j = pl.program_id(1)

    @pl.when(j == 0)
    def _init():
        m_sc[...] = jnp.full_like(m_sc, NEG_INF)
        l_sc[...] = jnp.zeros_like(l_sc)
        acc_sc[...] = jnp.zeros_like(acc_sc)

    # Block-sparsity skip: the whole (i,j) incidence tile is zero -> no work.
    @pl.when(flag_ref[i, j] != 0)
    def _compute():
        if kv_resident:
            row = pl.multiple_of(j * TILE, TILE)
            k = kv_ref[pl.ds(row, TILE), pl.ds(0, dq)]
            v = kv_ref[pl.ds(row, TILE), pl.ds(dq, dv)]
        else:
            k = kv_ref[:, pl.ds(0, dq)]
            v = kv_ref[:, pl.ds(dq, dv)]

        # scores: contract feature dims directly (no .T / XLU transpose)
        s = lax.dot_general(q_ref[...], k,
                            dimension_numbers=(((1,), (1,)), ((), ())),
                            preferred_element_type=jnp.float32)
        # leaky_relu; 1/sqrt(query_dim) already folded into the q projection
        s = jnp.maximum(s, LEAKY_SLOPE * s)

        mbool = m_ref[...] != 0                 # int8 incidence tile, no f32 convert
        s = jnp.where(mbool, s, NEG_INF)

        m_prev = m_sc[...]
        m_new = jnp.maximum(m_prev, jnp.max(s, axis=-1, keepdims=True))
        # bf16 exps on v6e/v7x; m/l/acc state stays f32
        alpha = jnp.exp((m_prev - m_new).astype(exp_dtype)).astype(jnp.float32)
        # the where() is load-bearing for all-masked rows (m stays at NEG_INF)
        p = jnp.where(mbool, jnp.exp((s - m_new).astype(exp_dtype)), 0.0)
        l_sc[...] = alpha * l_sc[...] + jnp.sum(p.astype(jnp.float32), axis=-1,
                                                keepdims=True)
        acc_sc[...] = alpha * acc_sc[...] + lax.dot_general(
            p.astype(jnp.bfloat16), v,
            dimension_numbers=(((1,), (0,)), ((), ())),
            preferred_element_type=jnp.float32)
        m_sc[...] = m_new

    @pl.when(j == pl.num_programs(1) - 1)
    def _finalize():
        l = l_sc[...]
        inv = pl.reciprocal(jnp.where(l > 0.0, l, 1.0), approx=True)  # EUP divide
        h = jnp.maximum(acc_sc[...] * inv, 0.0)   # F.relu fused; isolated dsts -> 0
        if has_drop:
            h = h * d_ref[...].astype(jnp.float32)  # F.dropout fused (bf16 keep mask)
        o_ref[...] = h.astype(o_ref.dtype)


def hyper_attn_mp(q, kv, mask, tile_flags, *, dq, dv, drop=None):
    """q:[Ndp,dq] bf16, kv:[Nsp,dq+dv] bf16 (fused K|V), mask:[Ndp,Nsp] int8,
    tile_flags:[Ndp/T, Nsp/T] int32 (tile-nonzero flags), drop (optional):
    [Ndp,dv] bf16 keep/(1-p) mask. All dims pre-padded."""
    ndp = q.shape[0]
    nsp, dqv = kv.shape
    assert dqv == dq + dv
    grid = (ndp // TILE, nsp // TILE)

    # K/V residency: keep the fused K|V array in VMEM across the whole grid
    # (constant index_map -> fetched once), slicing rows in-kernel; fall back
    # to streaming TILE-row blocks if it does not fit the per-core budget.
    resident_bytes = 2 * nsp * dqv * 2
    stream_bytes = (2 * (TILE * dq * 2 + TILE * TILE * 1)
                    + 2 * TILE * dv * 2 * (2 if drop is not None else 1)
                    + TILE * (dv + 2) * 4)
    kv_resident = resident_bytes + stream_bytes <= VMEM_BUDGET

    if kv_resident:
        kv_spec = pl.BlockSpec((nsp, dqv), lambda i, j, fl: (0, 0))
    else:
        kv_spec = pl.BlockSpec((TILE, dqv), lambda i, j, fl: (j, 0))

    in_specs = [
        pl.BlockSpec((TILE, dq), lambda i, j, fl: (i, 0)),      # q (dst-resident)
        kv_spec,                                                # fused K|V
        pl.BlockSpec((TILE, TILE), lambda i, j, fl: (i, j)),    # incidence tile
    ]
    args = [q, kv, mask]
    if drop is not None:
        in_specs.append(pl.BlockSpec((TILE, dv), lambda i, j, fl: (i, 0)))
        args.append(drop)

    kern = functools.partial(_hyper_attn_kernel, dq=dq, dv=dv,
                             kv_resident=kv_resident,
                             has_drop=drop is not None, exp_dtype=EXP_DTYPE)
    return pl.pallas_call(
        kern,
        out_shape=jax.ShapeDtypeStruct((ndp, dv), jnp.bfloat16),
        grid_spec=pltpu.PrefetchScalarGridSpec(
            num_scalar_prefetch=1,
            grid=grid,
            in_specs=in_specs,
            out_specs=pl.BlockSpec((TILE, dv), lambda i, j, fl: (i, 0)),
            scratch_shapes=[
                pltpu.VMEM((TILE, 1), jnp.float32),   # running max
                pltpu.VMEM((TILE, 1), jnp.float32),   # running denom
                pltpu.VMEM((TILE, dv), jnp.float32),  # running accumulator
            ]),
        compiler_params=pltpu.CompilerParams(
            dimension_semantics=("parallel", "arbitrary"),
            vmem_limit_bytes=VMEM_BUDGET),
    )(tile_flags, *args)


# ----------------------------------------------------------------------------
# Parameter init (torch.nn.Linear-style) and prep (fuse / fold / pad / cast)
# ----------------------------------------------------------------------------
def init_linear(key, din, dout):
    k1, k2 = jax.random.split(key)
    bound = 1.0 / math.sqrt(din)
    w = jax.random.uniform(k1, (din, dout), jnp.float32, -bound, bound)
    b = jax.random.uniform(k2, (dout,), jnp.float32, -bound, bound)
    return w, b


def init_layer(key, input_vdim, input_edim, query_dim, vertex_dim, edge_dim):
    ks = jax.random.split(key, 7)
    return {
        "vtx": init_linear(ks[0], input_vdim, vertex_dim),
        "qe":  init_linear(ks[1], input_edim, query_dim),
        "kv":  init_linear(ks[2], vertex_dim, query_dim),
        "vv":  init_linear(ks[3], vertex_dim, edge_dim),
        "qv":  init_linear(ks[4], vertex_dim, query_dim),
        "ke":  init_linear(ks[5], edge_dim, query_dim),
        "ve":  init_linear(ks[6], edge_dim, vertex_dim),
    }


def prepare_layer(params, query_dim):
    """Fuse shared-input projections, fold 1/sqrt(query_dim) into q weights,
    zero-pad every dim to a multiple of 128, cast weights to bf16."""
    input_vdim, vertex_dim = params["vtx"][0].shape
    input_edim = params["qe"][0].shape[0]
    edge_dim = params["vv"][0].shape[1]
    ivp, iep = _round_up(input_vdim, 128), _round_up(input_edim, 128)
    vp, ep, dqp = _round_up(vertex_dim, 128), _round_up(edge_dim, 128), _round_up(query_dim, 128)
    scale = 1.0 / math.sqrt(query_dim)

    def prep(w, b, kp, np_, s=1.0):
        wp = _pad2d(w * s, kp, np_).astype(jnp.bfloat16)
        bp = jnp.pad(b * s, (0, np_ - b.shape[0])).astype(jnp.float32).reshape(1, np_)
        return wp, bp

    def fuse(wa, ba, na, wb, bb, nb, kp):
        w = jnp.concatenate([_pad2d(wa, kp, na), _pad2d(wb, kp, nb)], axis=1)
        b = jnp.concatenate([jnp.pad(ba, (0, na - ba.shape[0])),
                             jnp.pad(bb, (0, nb - bb.shape[0]))])
        return w.astype(jnp.bfloat16), b.astype(jnp.float32).reshape(1, na + nb)

    return {
        "vtx":   prep(*params["vtx"], ivp, vp),
        "qe":    prep(*params["qe"],  iep, dqp, scale),   # scale folded (leaky_relu pos. homog.)
        "qv":    prep(*params["qv"],  vp,  dqp, scale),
        "kv_vv": fuse(*params["kv"], dqp, *params["vv"], ep, vp),   # [vp, dqp+ep]
        "ke_ve": fuse(*params["ke"], dqp, *params["ve"], vp, ep),   # [ep, dqp+vp]
        "dqp": dqp, "vp": vp, "ep": ep, "ivp": ivp, "iep": iep,
        "vertex_dim": vertex_dim, "edge_dim": edge_dim,
    }


# ----------------------------------------------------------------------------
# HyperAttnLayer / HyperAttn forward
# ----------------------------------------------------------------------------
def hyper_attn_layer(prep, m1, m2, f1, f2, vf, ef, *, dropout_p, drop_key):
    dqp, vp, ep = prep["dqp"], prep["vp"], prep["ep"]

    # ---- stage 1: vertices -> hyperedges (g1, etype 'in') ----
    feat_v = linear_padded(vf, *prep["vtx"])          # vtx_lin
    kv1 = linear_padded(feat_v, *prep["kv_vv"])       # fused kv_lin | vv_lin (no slice)
    q1 = linear_padded(ef, *prep["qe"])               # qe_lin (scaled) on raw efeat
    feat_e = hyper_attn_mp(q1, kv1, m1, f1, dq=dqp, dv=ep)

    # ---- stage 2: hyperedges -> vertices (g2, etype 'con') ----
    kv2 = linear_padded(feat_e, *prep["ke_ve"])       # fused ke_lin | ve_lin (no slice)
    q2 = linear_padded(feat_v, *prep["qv"])           # qv_lin (scaled)
    drop = None
    if dropout_p > 0.0:
        # TODO(synk): RNG stream differs from torch's dropout RNG (statistically equivalent).
        keep = jax.random.bernoulli(drop_key, 1.0 - dropout_p, (q2.shape[0], vp))
        drop = keep.astype(jnp.bfloat16) * (1.0 / (1.0 - dropout_p))
    feat_v_out = hyper_attn_mp(q2, kv2, m2, f2, dq=dqp, dv=vp, drop=drop)
    return feat_v_out, feat_e


def _tile_flags(mask):
    gi, gj = mask.shape[0] // TILE, mask.shape[1] // TILE
    return jnp.any(mask.reshape(gi, TILE, gj, TILE) != 0, axis=(1, 3)).astype(jnp.int32)


def hyper_attn_forward(prepped_layers, layer_dropouts, blocks, vfeat, efeat, *, rng_key):
    nv, ne = vfeat.shape[0], efeat.shape[0]
    nvp, nep = _round_up(nv, TILE), _round_up(ne, TILE)

    p0 = prepped_layers[0]
    vf = _pad2d(vfeat, nvp, p0["ivp"]).astype(jnp.bfloat16)
    ef = _pad2d(efeat, nep, p0["iep"]).astype(jnp.bfloat16)

    # pad incidence masks once (int8) and precompute per-tile nonzero flags
    padded_blocks, tile_flags = [], []
    for i in range(len(prepped_layers)):
        b1 = _pad2d(blocks[2 * i], nep, nvp).astype(jnp.int8)
        b2 = _pad2d(blocks[2 * i + 1], nvp, nep).astype(jnp.int8)
        padded_blocks += [b1, b2]
        tile_flags += [_tile_flags(b1), _tile_flags(b2)]

    key = rng_key
    for i, (prep, p_drop) in enumerate(zip(prepped_layers, layer_dropouts)):
        key, sub = jax.random.split(key)
        vf, ef = hyper_attn_layer(prep,
                                  padded_blocks[2 * i], padded_blocks[2 * i + 1],
                                  tile_flags[2 * i], tile_flags[2 * i + 1],
                                  vf, ef, dropout_p=p_drop, drop_key=sub)

    last = prepped_layers[-1]
    out_v = vf[:nv, :last["vertex_dim"]].astype(jnp.float32)
    out_e = ef[:ne, :last["edge_dim"]].astype(jnp.float32)
    return out_v, out_e


# ----------------------------------------------------------------------------
# Main
# ----------------------------------------------------------------------------
if __name__ == "__main__":
    # small, forward-consistent shapes
    Nv, Ne = 16, 8
    input_vdim, input_edim = 16, 16
    hidden_dim = 32
    output_vdim, output_edim = 32, 32
    query_dim = 32
    dropout = 0.5

    key = jax.random.PRNGKey(0)
    k_v, k_e, k_m, k_l0, k_l1, k_drop = jax.random.split(key, 6)

    vfeat = jax.random.normal(k_v, (Nv, input_vdim), jnp.float32)
    efeat = jax.random.normal(k_e, (Ne, input_edim), jnp.float32)

    # incidence mask; guarantee every hyperedge and every vertex has >=1 incidence
    m1 = jax.random.bernoulli(k_m, 0.4, (Ne, Nv)).astype(jnp.float32)
    ev = jnp.zeros((Ne, Nv), jnp.float32)
    ev = ev.at[jnp.arange(Ne), jnp.arange(Ne) % Nv].set(1.0)
    ev = ev.at[jnp.arange(Nv) % Ne, jnp.arange(Nv)].set(1.0)
    m1 = jnp.maximum(m1, ev)          # [Ne, Nv] : vertex -> hyperedge
    m2 = m1.T                         # [Nv, Ne] : hyperedge -> vertex
    blocks = [m1, m2, m1, m2]

    # HyperAttn with num_layer=2:
    #   layer 0: (input_vdim, input_edim) -> (hidden, hidden), dropout=0.0
    #   layer 1: (hidden, hidden) -> (output_vdim, output_edim), dropout=0.5
    layer_params = [
        init_layer(k_l0, input_vdim, input_edim, query_dim, hidden_dim, hidden_dim),
        init_layer(k_l1, hidden_dim, hidden_dim, query_dim, output_vdim, output_edim),
    ]
    prepped = [prepare_layer(p, query_dim) for p in layer_params]
    layer_dropouts = [0.0, dropout]

    out_v, out_e = hyper_attn_forward(
        prepped, layer_dropouts, blocks, vfeat, efeat, rng_key=k_drop)
    jax.block_until_ready((out_v, out_e))
    assert out_v.shape == (Nv, output_vdim) and out_e.shape == (Ne, output_edim)
    assert bool(jnp.all(jnp.isfinite(out_v))) and bool(jnp.all(jnp.isfinite(out_e)))
    print("KERNEL_OK")
</pallas_src>

<mosaic_0001>
module attributes {stable_mosaic.version = 11 : i64} {
  func.func @_linear_fullk_kernel(%arg0: i32, %arg1: memref<128x128xbf16, #tpu.memory_space<vmem>>, %arg2: memref<128x128xbf16, #tpu.memory_space<vmem>>, %arg3: memref<1x128xf32, #tpu.memory_space<vmem>>, %arg4: memref<128x128xbf16, #tpu.memory_space<vmem>>) attributes {dimension_semantics = [#tpu.dimension_semantics<parallel>], iteration_bounds = array<i64: 1>, scalar_prefetch = 0 : i64, scratch_operands = 0 : i64, tpu.core_type = #tpu.core_type<tc>, window_params = [{transform_indices = @transform_0, window_bounds = array<i64: 128, 128>}, {pipeline_mode = #tpu.pipeline_mode<synchronous>, transform_indices = @transform_1, window_bounds = array<i64: 128, 128>}, {pipeline_mode = #tpu.pipeline_mode<synchronous>, transform_indices = @transform_2, window_bounds = array<i64: 1, 128>}, {transform_indices = @transform_3, window_bounds = array<i64: 128, 128>}]} {
    %c0 = arith.constant 0 : index
    %c0_0 = arith.constant 0 : index
    %0 = vector.load %arg1[%c0, %c0_0] : memref<128x128xbf16, #tpu.memory_space<vmem>>, vector<128x128xbf16>
    %c0_1 = arith.constant 0 : index
    %c0_2 = arith.constant 0 : index
    %1 = vector.load %arg2[%c0_1, %c0_2] : memref<128x128xbf16, #tpu.memory_space<vmem>>, vector<128x128xbf16>
    %cst = arith.constant dense<0.000000e+00> : vector<128x128xf32>
    %2 = tpu.matmul %0, %1, %cst {dimension_numbers = #tpu.dot_dimension_numbers<[1], [0], [0], [1], [0, 0, 1, 1], [], []>} : vector<128x128xbf16>, vector<128x128xbf16>, vector<128x128xf32> -> vector<128x128xf32>
    %c0_3 = arith.constant 0 : index
    %c0_4 = arith.constant 0 : index
    %3 = vector.load %arg3[%c0_3, %c0_4] : memref<1x128xf32, #tpu.memory_space<vmem>>, vector<1x128xf32>
    %4 = vector.broadcast %3 : vector<1x128xf32> to vector<128x128xf32>
    %5 = arith.addf %2, %4 : vector<128x128xf32>
    %6 = arith.truncf %5 : vector<128x128xf32> to vector<128x128xbf16>
    %c0_5 = arith.constant 0 : index
    %c0_6 = arith.constant 0 : index
    %7 = vector.load %arg4[%c0_5, %c0_6] : memref<128x128xbf16, #tpu.memory_space<vmem>>, vector<128x128xbf16>
    tpu.vector_store %arg4[%c0_5, %c0_6], %6 {strides = array<i32>} : memref<128x128xbf16, #tpu.memory_space<vmem>>, vector<128x128xbf16>,
    return
  }
  func.func @transform_0(%arg0: i32) -> (i32, i32) {
    %c0_i32 = arith.constant 0 : i32
    %c0_i32_0 = arith.constant 0 : i32
    return %arg0, %c0_i32 : i32, i32
  }
  func.func @transform_1(%arg0: i32) -> (i32, i32) {
    %c0_i32 = arith.constant 0 : i32
    %c0_i32_0 = arith.constant 0 : i32
    %c0_i32_1 = arith.constant 0 : i32
    return %c0_i32, %c0_i32_0 : i32, i32
  }
  func.func @transform_2(%arg0: i32) -> (i32, i32) {
    %c0_i32 = arith.constant 0 : i32
    %c0_i32_0 = arith.constant 0 : i32
    %c0_i32_1 = arith.constant 0 : i32
    return %c0_i32, %c0_i32_0 : i32, i32
  }
  func.func @transform_3(%arg0: i32) -> (i32, i32) {
    %c0_i32 = arith.constant 0 : i32
    %c0_i32_0 = arith.constant 0 : i32
    return %arg0, %c0_i32 : i32, i32
  }
}

</mosaic_0001>

<bundles_post_ra>
// kernel: tpu_custom_call.1
= control target key start
LH: loop header
LB: loop body
LE: loop exit
PB: predicated region body
PF: predicated region fallthrough
CT: control target
= control target key end

     0   :  { %8 = vsyncpa [#allocation3], 0  ;;  %s700_s0 = inlined_call_operand.hbm [shape: bf16[128,128], index: 0, kind: input, shape index: {}]   ;;  %s701_s1 = inlined_call_operand.hbm [shape: bf16[128,128], index: 1, kind: input, shape index: {}]   ;;  %s702_s2 = inlined_call_operand.vmem [shape: f32[1,128], index: 2, kind: input, shape index: {}]   ;;  %s703_s3 = inlined_call_operand.hbm [shape: bf16[128,128], index: 3, kind: output, shape index: {}]  }
   0x1   :  { %9 = vsyncpa [#allocation6], 0 }
   0x2   :  { %10 = vsyncpa [#allocation4], 0  ;;  %s627_s12 = smov [#allocation2]   ;;  %s555_s16 = scalar_lea.hbm %s700_s0, 1024 }
   0x3   :  { %s16_s13 = sshll.u32 %s627_s12, 4  ;;  %p556_p0 = scmp.ne.s32.totalorder %s700_s0, %s555_s16  ;;  %s17_s13 = int_to_ptr.vmem [resolvable:$true] %s16_s13 }
   0x4   :  { %p559_p1 = scmp.lt.u32.totalorder %s555_s16, %s700_s0 }
   0x6   :  { %p561_p2 = pnand %p559_p1, %p556_p0 }
   0x8   :  { %564 = shalt.err (!%p561_p2)
}
   0x9   :  { %s565_s21 = scalar_lea.vmem %s17_s13, 1024  ;;  %p570_p4 = scmp.lt.s32.totalorder %s17_s13, %s17_s13 }
   0xa   :  { %p566_p3 = scmp.ne.s32.totalorder %s17_s13, %s565_s21  ;;  %p571_p5 = scmp.lt.s32.totalorder %s565_s21, %s565_s21 }
   0xc   :  { %p572_p6 = por %p571_p5, %p570_p4 }
   0xe   :  { %p573_p7 = pnand %p572_p6, %p566_p3 }
  0x10   :  { %576 = shalt.err (!%p573_p7)
}
  0x11   :  { %s628_s22 = smov 64   ;;  %s629_s23 = smov 4  }
  0x12   :  { %22 = dma.hbm_to_vmem [thread:$0]  %s700_s0, 1024, %s17_s13, [#allocation3], %s628_s22, %s628_s22, %s629_s23  }
  0x13   :  { %s630_s26 = smov [#allocation5]   ;;  %s577_s30 = scalar_lea.hbm %s701_s1, 1024 }
  0x14   :  { %s28_s27 = sshll.u32 %s630_s26, 4  ;;  %p578_p8 = scmp.ne.s32.totalorder %s701_s1, %s577_s30  ;;  %s29_s27 = int_to_ptr.vmem [resolvable:$true] %s28_s27 }
  0x15   :  { %p581_p9 = scmp.lt.u32.totalorder %s577_s30, %s701_s1 }
  0x17   :  { %p583_p10 = pnand %p581_p9, %p578_p8 }
  0x19   :  { %586 = shalt.err (!%p583_p10)
}
  0x1a   :  { %s587_s8 = scalar_lea.vmem %s29_s27, 1024  ;;  %p592_p12 = scmp.lt.s32.totalorder %s29_s27, %s29_s27 }
  0x1b   :  { %p588_p11 = scmp.ne.s32.totalorder %s29_s27, %s587_s8  ;;  %p593_p13 = scmp.lt.s32.totalorder %s587_s8, %s587_s8 }
  0x1d   :  { %p594_p0 = por %p593_p13, %p592_p12 }
  0x1f   :  { %p595_p1 = pnand %p594_p0, %p588_p11 }
  0x21   :  { %598 = shalt.err (!%p595_p1)
}
  0x22   :  { %34 = dma.hbm_to_vmem [thread:$0]  %s701_s1, 1024, %s29_s27, [#allocation6], %s628_s22, %s628_s22, %s629_s23  }
  0x23   :  { %621 = dma.done.wait [#allocation3], 1024  }
  0x24   :  { %622 = vsyncadd [#allocation3], 4294966272 }
  0x25   :  { %623 = dma.done.wait [#allocation6], 1024  }
  0x26   :  { %624 = vsyncadd [#allocation6], 4294966272  ;;  %v539_v0 = vld [vmem:[#allocation5] sm:$0xff]   ;;  %v540_v1 = vld [vmem:[#allocation5 + $0x8] sm:$0xff]  }
  0x27   :  { %486 = vmatprep.subr.bf16.mxu0 %v539_v0  ;;  %518 = vmatprep.subr.bf16.mxu1 %v539_v0  ;;  %v541_v2 = vld [vmem:[#allocation5 + $0x10] sm:$0xff]   ;;  %v542_v3 = vld [vmem:[#allocation5 + $0x18] sm:$0xff]   ;;  %v547_v4 = vld [vmem:[#allocation2] sm:$0xff]  }
  0x28   :  { %487 = vmatpush3.bf16.msra.mxu0 %v539_v0  ;;  %526 = vmatpush3.bf16.msra.mxu1 %v539_v0  ;;  %v548_v5 = vld [vmem:[#allocation2 + $0x20] sm:$0xff]   ;;  %v544_v7 = vld [vmem:[#allocation5 + $0x28] sm:$0xff]   ;;  %v545_v8 = vld [vmem:[#allocation5 + $0x30] sm:$0xff]  }
  0x29   :  { %488 = vmatprep.subr.bf16.mxu0 %v540_v1  ;;  %519 = vmatprep.subr.bf16.mxu1 %v540_v1  ;;  %v543_v6 = vld [vmem:[#allocation5 + $0x20] sm:$0xff]   ;;  %v546_v9 = vld [vmem:[#allocation5 + $0x38] sm:$0xff]   ;;  %v549_v10 = vld [vmem:[#allocation2 + $0x8] sm:$0xff]  }
  0x2a   :  { %502 = vmatprep.mubr.bf16.mxu0 %v547_v4  ;;  %510 = vmatprep.mubr.bf16.mxu1 %v548_v5  ;;  %v550_v11 = vld [vmem:[#allocation2 + $0x28] sm:$0xff]   ;;  %v551_v12 = vld [vmem:[#allocation2 + $0x10] sm:$0xff]   ;;  %v553_v14 = vld [vmem:[#allocation2 + $0x18] sm:$0xff]  }
  0x2b   :  { %v552_v13 = vld [vmem:[#allocation2 + $0x30] sm:$0xff]   ;;  %v554_v15 = vld [vmem:[#allocation2 + $0x38] sm:$0xff]   ;;  %v374_v17 = vld [vmem:[%s702_s2] ss:$0 sm:$0xff]  ;;  %s631_s2 = smov [#allocation7]  }
  0x2c   :  { %489 = vmatpush3.bf16.msra.mxu0 %v540_v1  ;;  %527 = vmatpush3.bf16.msra.mxu1 %v540_v1  ;;  %s361_s11 = sshll.u32 %s631_s2, 4  ;;  %s362_s11 = int_to_ptr.vmem [resolvable:$true] %s361_s11 }
  0x2d   :  { %490 = vmatprep.subr.bf16.mxu0 %v541_v2  ;;  %520 = vmatprep.subr.bf16.mxu1 %v541_v2  ;;  %s599_s12 = scalar_lea.vmem %s362_s11, 1024  ;;  %p604_p3 = scmp.lt.s32.totalorder %s362_s11, %s362_s11 }
  0x2e   :  { %p600_p2 = scmp.ne.s32.totalorder %s362_s11, %s599_s12  ;;  %p605_p4 = scmp.lt.s32.totalorder %s599_s12, %s599_s12 }
  0x30   :  { %491 = vmatpush3.bf16.msra.mxu0 %v541_v2  ;;  %528 = vmatpush3.bf16.msra.mxu1 %v541_v2  ;;  %p606_p5 = por %p605_p4, %p604_p3 }
  0x31   :  { %492 = vmatprep.subr.bf16.mxu0 %v542_v3  ;;  %521 = vmatprep.subr.bf16.mxu1 %v542_v3 }
  0x32   :  { %p607_p6 = pnand %p606_p5, %p600_p2 }
  0x34   :  { %493 = vmatpush3.bf16.msra.mxu0 %v542_v3  ;;  %529 = vmatpush3.bf16.msra.mxu1 %v542_v3 }
  0x35   :  { %494 = vmatprep.subr.bf16.mxu0 %v543_v6  ;;  %522 = vmatprep.subr.bf16.mxu1 %v543_v6 }
  0x38   :  { %495 = vmatpush3.bf16.msra.mxu0 %v543_v6  ;;  %530 = vmatpush3.bf16.msra.mxu1 %v543_v6 }
  0x39   :  { %496 = vmatprep.subr.bf16.mxu0 %v544_v7  ;;  %523 = vmatprep.subr.bf16.mxu1 %v544_v7 }
  0x3c   :  { %497 = vmatpush3.bf16.msra.mxu0 %v544_v7  ;;  %531 = vmatpush3.bf16.msra.mxu1 %v544_v7 }
  0x3d   :  { %498 = vmatprep.subr.bf16.mxu0 %v545_v8  ;;  %524 = vmatprep.subr.bf16.mxu1 %v545_v8 }
  0x40   :  { %499 = vmatpush3.bf16.msra.mxu0 %v545_v8  ;;  %532 = vmatpush3.bf16.msra.mxu1 %v545_v8 }
  0x41   :  { %500 = vmatprep.subr.bf16.mxu0 %v546_v9  ;;  %525 = vmatprep.subr.bf16.mxu1 %v546_v9 }
  0x44   :  { %501 = vmatpush3.bf16.msra.mxu0 %v546_v9  ;;  %533 = vmatpush3.bf16.msra.mxu1 %v546_v9 }
  0x47   :  { %503 = vmatmul.mubr.bf16.vlgmr.msra.gmra.mrb[0].mxu0 %v549_v10  ;;  %511 = vmatmul.mubr.bf16.vlgmr.msra.gmra.mrb[0].mxu1 %v550_v11 }
  0x48   :  { %506 = vmatprep.mubr.bf16.mxu0 %v551_v12  ;;  %514 = vmatprep.mubr.bf16.mxu1 %v552_v13 }
  0x4f   :  { %507 = vmatmul.mubr.bf16.gmra.mrb[4].mxu0 %v553_v14  ;;  %515 = vmatmul.mubr.bf16.gmra.mrb[4].mxu1 %v554_v15 }
 0x11a   :  { %v504_v16 = vpop.f32.mrb[0].mxu0  ;;  %v512_v18 = vpop.f32.mrb[0].mxu1 }
 0x11b   :  { %v213_v19 = vpop.f32.mrb[1].mxu0  ;;  %v245_v20 = vpop.f32.mrb[1].mxu1  ;;  %v222_v23 = vadd.f32 %v504_v16, %v374_v17  ;;  %v254_v24 = vadd.f32 %v512_v18, %v374_v17 }
 0x11c   :  { %v505_v21 = vpop.f32.mrb[2].mxu0  ;;  %v513_v22 = vpop.f32.mrb[2].mxu1  ;;  %v214_v29 = vadd.f32 %v374_v17, %v213_v19  ;;  %v246_v30 = vadd.f32 %v374_v17, %v245_v20 }
 0x11d   :  { %v225_v25 = vadd.f32 %v505_v21, %v374_v17  ;;  %v257_v26 = vadd.f32 %v513_v22, %v374_v17  ;;  %v216_v27 = vpop.f32.mrb[3].mxu0  ;;  %v248_v28 = vpop.f32.mrb[3].mxu1 }
 0x11e   :  { %v217_v31 = vadd.f32 %v374_v17, %v216_v27  ;;  %v249_v32 = vadd.f32 %v374_v17, %v248_v28 }
 0x11f   :  { %v431_v33 = vpack.c.bf16 %v225_v25, %v222_v23  ;;  %v451_v34 = vpack.c.bf16 %v257_v26, %v254_v24 }
 0x120   :  { %v426_v35 = vpack.c.bf16 %v217_v31, %v214_v29  ;;  %v446_v36 = vpack.c.bf16 %v249_v32, %v246_v30 }
 0x121   :  { %463 = vst [vmem:[#allocation7 + $0x8] sm:$0xff] %v431_v33   ;;  %467 = vst [vmem:[#allocation7 + $0x28] sm:$0xff] %v451_v34  }
 0x122   :  { %427 = vst [vmem:[#allocation7] sm:$0xff] %v426_v35   ;;  %466 = vst [vmem:[#allocation7 + $0x20] sm:$0xff] %v446_v36   ;;  %v508_v37 = vpop.f32.mrb[4].mxu0  ;;  %v516_v38 = vpop.f32.mrb[4].mxu1 }
 0x123   :  { %v229_v39 = vpop.f32.mrb[5].mxu0  ;;  %v261_v40 = vpop.f32.mrb[5].mxu1  ;;  %v238_v43 = vadd.f32 %v508_v37, %v374_v17  ;;  %v270_v44 = vadd.f32 %v516_v38, %v374_v17 }
 0x124   :  { %v509_v41 = vpop.f32.mrb[6].mxu0  ;;  %v517_v42 = vpop.f32.mrb[6].mxu1  ;;  %v230_v49 = vadd.f32 %v374_v17, %v229_v39  ;;  %v262_v50 = vadd.f32 %v374_v17, %v261_v40 }
 0x125   :  { %v241_v45 = vadd.f32 %v509_v41, %v374_v17  ;;  %v273_v46 = vadd.f32 %v517_v42, %v374_v17  ;;  %v232_v47 = vpop.f32.mrb[7].mxu0  ;;  %v264_v48 = vpop.f32.mrb[7].mxu1 }
 0x126   :  { %v233_v51 = vadd.f32 %v374_v17, %v232_v47  ;;  %v265_v52 = vadd.f32 %v374_v17, %v264_v48 }
 0x127   :  { %v441_v53 = vpack.c.bf16 %v241_v45, %v238_v43  ;;  %v461_v54 = vpack.c.bf16 %v273_v46, %v270_v44 }
 0x128   :  { %v436_v55 = vpack.c.bf16 %v233_v51, %v230_v49  ;;  %v456_v56 = vpack.c.bf16 %v265_v52, %v262_v50 }
 0x129   :  { %465 = vst [vmem:[#allocation7 + $0x18] sm:$0xff] %v441_v53   ;;  %469 = vst [vmem:[#allocation7 + $0x38] sm:$0xff] %v461_v54  }
 0x12a   :  { %464 = vst [vmem:[#allocation7 + $0x10] sm:$0xff] %v436_v55   ;;  %468 = vst [vmem:[#allocation7 + $0x30] sm:$0xff] %v456_v56  }
 0x12b   :  { %610 = shalt.err (!%p607_p6)
}
 0x12c   :  { %s611_s15 = scalar_lea.hbm %s703_s3, 1024 }
 0x12d   :  { %p612_p7 = scmp.ne.s32.totalorder %s703_s3, %s611_s15  ;;  %p615_p8 = scmp.lt.u32.totalorder %s611_s15, %s703_s3 }
 0x12f   :  { %p617_p9 = pnand %p615_p8, %p612_p7 }
 0x131   :  { %620 = shalt.err (!%p617_p9)
}
 0x132   :  { %367 = dma.vmem_to_hbm [thread:$0]  %s362_s11, 1024, %s703_s3, [#allocation4], %s628_s22, %s628_s22, %s629_s23  }
 0x133   :  { %625 = dma.done.wait [#allocation4], 1024  }
 0x134   :  { %626 = vsyncadd [#allocation4], 4294966272 }
 0x135   :  { %371 = vsyncpa [#allocation3], 1 }
 0x136   :  { %372 = vsyncpa [#allocation6], 1 }
 0x137   :  { %373 = vsyncpa [#allocation4], 1 }

</bundles_post_ra>
